<compile_context>
chip_gen: v7x
topology: tpu7x:2x2x1
jax: 0.10.0
libtpu: 0.0.40
codegen_flags: <defaults>
</compile_context>

<pallas_src>
import jax
import jax.numpy as jnp
from jax.experimental import pallas as pl
from jax.experimental.pallas import tpu as pltpu


def _pred_layer_kernel(x_ref, scale_ref, shift_ref, w_ref, b_ref, o_ref):
    # x_ref:     (Bt, Cin, TM)   lane-dense tile of X[N, Cin, H*W] (NCHW-native)
    # scale_ref: (Cin, 1)        folded BN scale (compute dtype)
    # shift_ref: (Cin, 1)        folded BN shift (compute dtype)
    # w_ref:     (Cout, Cin)     conv1x1 weight (compute dtype, pre-cast on host)
    # b_ref:     (Cout, 1)       conv1x1 bias (f32)
    # o_ref:     (Bt, Cout, TM)  lane-dense output tile
    w = w_ref[...]
    scale = scale_ref[...]
    shift = shift_ref[...]
    bias = b_ref[...]
    for b in range(x_ref.shape[0]):                 # Bt is small and static -> unrolled
        h = jnp.maximum(x_ref[b] * scale + shift, 0)            # BN affine + ReLU (VPU)
        # Dropout2d(0.1) is identity in eval mode.
        y = jnp.dot(w, h, preferred_element_type=jnp.float32)   # 1x1 conv (MXU, f32 acc)
        o_ref[b] = (y + bias).astype(o_ref.dtype)


def _const_spec(shape):
    """BlockSpec for a grid-invariant (resident) input; single-buffered when supported."""
    idx = lambda n, m: (0,) * len(shape)
    try:
        return pl.BlockSpec(shape, idx, pipeline_mode=pl.Buffered(1))
    except Exception:  # older jax without pipeline_mode / Buffered
        return pl.BlockSpec(shape, idx)


def _choose_blocking(N, HW, per_image_lane_bytes, budget_bytes,
                     target_lanes=512, max_lanes_cap=4096):
    """Pick (Bt images per step, tile_m lanes per step) under a VMEM budget.

    tile_m is a multiple of 128 and <= HW (partial final block is masked by Pallas),
    unless a whole small image fits in one step, in which case tile_m == HW (full
    last-dim extent) and several batch images are blocked together.
    """
    max_lanes = budget_bytes // max(per_image_lane_bytes, 1)
    max_lanes = max(128, min(max_lanes, max_lanes_cap))
    max_lanes = (max_lanes // 128) * 128

    if HW >= target_lanes or HW > max_lanes:
        # Tile along H*W only; one image per grid step.
        bt = 1
        tile_m = max(128, min(max_lanes, (HW // 128) * 128))
        n_tiles = -(-HW // tile_m)
        # v7x: with N == 1 both TCs share the HW axis; prefer an even tile count.
        if N == 1 and n_tiles > 1 and n_tiles % 2 == 1:
            cand = ((-(-HW // (n_tiles + 1)) + 127) // 128) * 128
            if 128 <= cand <= HW and (-(-HW // cand)) % 2 == 0:
                tile_m = cand
    else:
        # Whole (small) image per step; block several batch images together.
        tile_m = HW
        bt = 1
        d_max = min(N, max(1, max_lanes // max(HW, 1)))
        for d in range(d_max, 0, -1):
            if N % d == 0:
                bt = d
                break
    return bt, tile_m


def pred_layer_forward(x_nchw, params, *, eps=1e-5, tile_m=None, batch_block=None):
    """x_nchw: (N, Cin, H, W). Returns (N, Cout, H, W). Eval-mode forward."""
    gamma, beta, running_mean, running_var, conv_w, conv_b = (
        params["gamma"], params["beta"], params["running_mean"],
        params["running_var"], params["conv_w"], params["conv_b"],
    )
    N, Cin, H, W = x_nchw.shape
    Cout = conv_w.shape[0]
    HW = H * W
    in_dtype = x_nchw.dtype
    in_itemsize = jnp.dtype(in_dtype).itemsize

    # bf16 inputs use the native bf16 VPU/MXU path; everything else computes in f32.
    compute_dtype = jnp.bfloat16 if in_dtype == jnp.bfloat16 else jnp.float32
    compute_itemsize = jnp.dtype(compute_dtype).itemsize

    # Fold BatchNorm (eval) into a per-channel affine (done in f32 on the host).
    scale = gamma.astype(jnp.float32) / jnp.sqrt(running_var.astype(jnp.float32) + eps)
    shift = beta.astype(jnp.float32) - running_mean.astype(jnp.float32) * scale

    # NCHW -> (N, Cin, HW): free reshape (merges contiguous trailing dims), no transpose,
    # no padding pass and no post-kernel slice.
    x3 = x_nchw.reshape(N, Cin, HW)
    wt = conv_w.reshape(Cout, Cin).astype(compute_dtype)          # pre-cast: hoisted out of kernel
    scale2d = scale.reshape(Cin, 1).astype(compute_dtype)
    shift2d = shift.reshape(Cin, 1).astype(compute_dtype)
    bias2d = conv_b.reshape(Cout, 1).astype(jnp.float32)

    # Physical VMEM (v7x: 64 MiB/TC, v5e/v6e: 128 MiB); fall back conservatively.
    try:
        vmem_physical = int(pltpu.get_tpu_info().vmem_capacity_bytes)
    except Exception:
        vmem_physical = 64 * 1024 * 1024
    budget = min(vmem_physical // 3, 40 * 1024 * 1024)  # ~21 MiB on v7x, 40 MiB on 128 MiB parts

    # Honest per-lane footprint: double-buffered x/out tiles + in-kernel intermediates
    # (h in compute dtype + f32 matmul accumulator).
    per_image_lane_bytes = (2 * (Cin + Cout) * in_itemsize
                            + Cin * compute_itemsize + Cout * 4)

    bt, tm = _choose_blocking(N, HW, per_image_lane_bytes, budget)
    if batch_block is not None:
        bt = int(batch_block)
    if tile_m is not None:
        tm = int(tile_m)
    if N % bt != 0:
        bt = 1
    num_m = -(-HW // tm)
    grid = (N // bt, num_m)

    const_bytes = (Cout * Cin + 2 * Cin) * compute_itemsize + Cout * 4
    per_step_bytes = per_image_lane_bytes * bt * tm + const_bytes
    vmem_limit = max(32 * 1024 * 1024, per_step_bytes + 8 * 1024 * 1024)
    vmem_limit = min(vmem_limit, vmem_physical - 4 * 1024 * 1024)

    # Advisory cost hint: this kernel is HBM-bandwidth bound.
    flops = 2 * N * HW * Cin * Cout
    bytes_accessed = N * HW * (Cin + Cout) * in_itemsize + const_bytes

    out3 = pl.pallas_call(
        _pred_layer_kernel,
        out_shape=jax.ShapeDtypeStruct((N, Cout, HW), in_dtype),
        grid=grid,
        in_specs=[
            pl.BlockSpec((bt, Cin, tm), lambda n, m: (n, 0, m)),   # x tile (lane-dense)
            _const_spec((Cin, 1)),                                 # BN scale (resident)
            _const_spec((Cin, 1)),                                 # BN shift (resident)
            _const_spec((Cout, Cin)),                              # conv weight (resident)
            _const_spec((Cout, 1)),                                # conv bias (resident)
        ],
        out_specs=pl.BlockSpec((bt, Cout, tm), lambda n, m: (n, 0, m)),
        compiler_params=pltpu.CompilerParams(
            dimension_semantics=("parallel", "parallel"),
            vmem_limit_bytes=int(vmem_limit)),
        cost_estimate=pl.CostEstimate(flops=int(flops), transcendentals=0,
                                      bytes_accessed=int(bytes_accessed)),
    )(x3, scale2d, shift2d, wt, bias2d)

    return out3.reshape(N, Cout, H, W)


def init_params(key, in_channels, out_channels):
    k1, k2, k3, k4 = jax.random.split(key, 4)
    return {
        # BatchNorm2d(in_channels) parameters / running stats
        "gamma": jax.random.normal(k1, (in_channels,), jnp.float32) * 0.1 + 1.0,
        "beta": jax.random.normal(k2, (in_channels,), jnp.float32) * 0.1,
        "running_mean": jax.random.normal(k3, (in_channels,), jnp.float32) * 0.1,
        "running_var": jnp.abs(jax.random.normal(k4, (in_channels,), jnp.float32)) * 0.1 + 1.0,
        # Conv2d(in_channels, out_channels, kernel_size=1)
        "conv_w": jax.random.normal(jax.random.fold_in(key, 5),
                                    (out_channels, in_channels, 1, 1), jnp.float32) * 0.1,
        "conv_b": jax.random.normal(jax.random.fold_in(key, 6),
                                    (out_channels,), jnp.float32) * 0.1,
    }


def _reference(x_nchw, params, eps=1e-5):
    """Pure-JAX reference mirroring PyTorch eval-mode forward."""
    g = params["gamma"][None, :, None, None]
    b = params["beta"][None, :, None, None]
    m = params["running_mean"][None, :, None, None]
    v = params["running_var"][None, :, None, None]
    h = (x_nchw - m) / jnp.sqrt(v + eps) * g + b
    h = jnp.maximum(h, 0.0)
    w = params["conv_w"].reshape(params["conv_w"].shape[0], -1)  # (Cout, Cin)
    return jnp.einsum("nchw,oc->nohw", h, w) + params["conv_b"][None, :, None, None]


if __name__ == "__main__":
    key = jax.random.PRNGKey(0)

    # Case 1: small image -> batch-blocked path (whole-image tiles, Bt = N).
    N, Cin, Cout, H, W = 2, 8, 4, 16, 16
    kx, kp = jax.random.split(key)
    x = jax.random.normal(kx, (N, Cin, H, W), jnp.float32)
    params = init_params(kp, Cin, Cout)
    out = jax.block_until_ready(pred_layer_forward(x, params))
    ref = _reference(x, params)
    assert out.shape == (N, Cout, H, W)
    assert jnp.allclose(out, ref, atol=1e-4, rtol=1e-4), float(jnp.max(jnp.abs(out - ref)))

    # Case 2: non-128-aligned H*W, N == 1 -> tiled HW axis with a masked partial final block.
    N2, H2, W2 = 1, 23, 23
    kx2 = jax.random.fold_in(key, 7)
    x2 = jax.random.normal(kx2, (N2, Cin, H2, W2), jnp.float32)
    out2 = jax.block_until_ready(pred_layer_forward(x2, params))
    ref2 = _reference(x2, params)
    assert out2.shape == (N2, Cout, H2, W2)
    assert jnp.allclose(out2, ref2, atol=1e-4, rtol=1e-4), float(jnp.max(jnp.abs(out2 - ref2)))

    print("KERNEL_OK")
</pallas_src>

<mosaic_0001>
module attributes {stable_mosaic.version = 11 : i64} {
  func.func @_pred_layer_kernel(%arg0: i32, %arg1: i32, %arg2: memref<2x8x256xf32, #tpu.memory_space<vmem>>, %arg3: memref<8x1xf32, #tpu.memory_space<vmem>>, %arg4: memref<8x1xf32, #tpu.memory_space<vmem>>, %arg5: memref<4x8xf32, #tpu.memory_space<vmem>>, %arg6: memref<4x1xf32, #tpu.memory_space<vmem>>, %arg7: memref<2x4x256xf32, #tpu.memory_space<vmem>>) attributes {dimension_semantics = [#tpu.dimension_semantics<parallel>, #tpu.dimension_semantics<parallel>], iteration_bounds = array<i64: 1, 1>, scalar_prefetch = 0 : i64, scratch_operands = 0 : i64, tpu.core_type = #tpu.core_type<tc>, window_params = [{transform_indices = @transform_0, window_bounds = array<i64: 2, 8, 256>}, {pipeline_mode = #tpu.pipeline_mode<synchronous>, transform_indices = @transform_1, window_bounds = array<i64: 8, 1>}, {pipeline_mode = #tpu.pipeline_mode<synchronous>, transform_indices = @transform_2, window_bounds = array<i64: 8, 1>}, {pipeline_mode = #tpu.pipeline_mode<synchronous>, transform_indices = @transform_3, window_bounds = array<i64: 4, 8>}, {pipeline_mode = #tpu.pipeline_mode<synchronous>, transform_indices = @transform_4, window_bounds = array<i64: 4, 1>}, {transform_indices = @transform_5, window_bounds = array<i64: 2, 4, 256>}]} {
    %c0 = arith.constant 0 : index
    %c0_0 = arith.constant 0 : index
    %0 = vector.load %arg5[%c0, %c0_0] : memref<4x8xf32, #tpu.memory_space<vmem>>, vector<4x8xf32>
    %c0_1 = arith.constant 0 : index
    %c0_2 = arith.constant 0 : index
    %1 = vector.load %arg3[%c0_1, %c0_2] : memref<8x1xf32, #tpu.memory_space<vmem>>, vector<8x1xf32>
    %c0_3 = arith.constant 0 : index
    %c0_4 = arith.constant 0 : index
    %2 = vector.load %arg4[%c0_3, %c0_4] : memref<8x1xf32, #tpu.memory_space<vmem>>, vector<8x1xf32>
    %c0_5 = arith.constant 0 : index
    %c0_6 = arith.constant 0 : index
    %3 = vector.load %arg6[%c0_5, %c0_6] : memref<4x1xf32, #tpu.memory_space<vmem>>, vector<4x1xf32>
    %c0_7 = arith.constant 0 : index
    %c0_8 = arith.constant 0 : index
    %c0_9 = arith.constant 0 : index
    %4 = vector.load %arg2[%c0_7, %c0_8, %c0_9] : memref<2x8x256xf32, #tpu.memory_space<vmem>>, vector<1x8x256xf32>
    %5 = vector.shape_cast %4 : vector<1x8x256xf32> to vector<8x256xf32>
    %6 = vector.broadcast %1 : vector<8x1xf32> to vector<8x256xf32>
    %7 = arith.mulf %5, %6 : vector<8x256xf32>
    %8 = vector.broadcast %2 : vector<8x1xf32> to vector<8x256xf32>
    %9 = arith.addf %7, %8 : vector<8x256xf32>
    %cst = arith.constant 0.000000e+00 : f32
    %10 = vector.broadcast %cst : f32 to vector<8x256xf32>
    %11 = arith.maximumf %9, %10 : vector<8x256xf32>
    %cst_10 = arith.constant dense<0.000000e+00> : vector<4x256xf32>
    %12 = tpu.matmul %0, %11, %cst_10 {dimension_numbers = #tpu.dot_dimension_numbers<[1], [0], [0], [1], [0, 0, 1, 1], [], []>} : vector<4x8xf32>, vector<8x256xf32>, vector<4x256xf32> -> vector<4x256xf32>
    %13 = vector.broadcast %3 : vector<4x1xf32> to vector<4x256xf32>
    %14 = arith.addf %12, %13 : vector<4x256xf32>
    %c0_11 = arith.constant 0 : index
    %c0_12 = arith.constant 0 : index
    %c0_13 = arith.constant 0 : index
    %15 = vector.load %arg7[%c0_11, %c0_12, %c0_13] : memref<2x4x256xf32, #tpu.memory_space<vmem>>, vector<1x4x256xf32>
    %16 = vector.shape_cast %15 : vector<1x4x256xf32> to vector<4x256xf32>
    %17 = vector.shape_cast %14 : vector<4x256xf32> to vector<1x4x256xf32>
    tpu.vector_store %arg7[%c0_11, %c0_12, %c0_13], %17 {strides = array<i32>} : memref<2x4x256xf32, #tpu.memory_space<vmem>>, vector<1x4x256xf32>,
    %c1 = arith.constant 1 : index
    %c0_14 = arith.constant 0 : index
    %c0_15 = arith.constant 0 : index
    %18 = vector.load %arg2[%c1, %c0_14, %c0_15] : memref<2x8x256xf32, #tpu.memory_space<vmem>>, vector<1x8x256xf32>
    %19 = vector.shape_cast %18 : vector<1x8x256xf32> to vector<8x256xf32>
    %20 = vector.broadcast %1 : vector<8x1xf32> to vector<8x256xf32>
    %21 = arith.mulf %19, %20 : vector<8x256xf32>
    %22 = vector.broadcast %2 : vector<8x1xf32> to vector<8x256xf32>
    %23 = arith.addf %21, %22 : vector<8x256xf32>
    %cst_16 = arith.constant 0.000000e+00 : f32
    %24 = vector.broadcast %cst_16 : f32 to vector<8x256xf32>
    %25 = arith.maximumf %23, %24 : vector<8x256xf32>
    %cst_17 = arith.constant dense<0.000000e+00> : vector<4x256xf32>
    %26 = tpu.matmul %0, %25, %cst_17 {dimension_numbers = #tpu.dot_dimension_numbers<[1], [0], [0], [1], [0, 0, 1, 1], [], []>} : vector<4x8xf32>, vector<8x256xf32>, vector<4x256xf32> -> vector<4x256xf32>
    %27 = vector.broadcast %3 : vector<4x1xf32> to vector<4x256xf32>
    %28 = arith.addf %26, %27 : vector<4x256xf32>
    %c1_18 = arith.constant 1 : index
    %c0_19 = arith.constant 0 : index
    %c0_20 = arith.constant 0 : index
    %29 = vector.load %arg7[%c1_18, %c0_19, %c0_20] : memref<2x4x256xf32, #tpu.memory_space<vmem>>, vector<1x4x256xf32>
    %30 = vector.shape_cast %29 : vector<1x4x256xf32> to vector<4x256xf32>
    %31 = vector.shape_cast %28 : vector<4x256xf32> to vector<1x4x256xf32>
    tpu.vector_store %arg7[%c1_18, %c0_19, %c0_20], %31 {strides = array<i32>} : memref<2x4x256xf32, #tpu.memory_space<vmem>>, vector<1x4x256xf32>,
    return
  }
  func.func @transform_0(%arg0: i32, %arg1: i32) -> (i32, i32, i32) {
    %c0_i32 = arith.constant 0 : i32
    %c0_i32_0 = arith.constant 0 : i32
    return %arg0, %c0_i32, %arg1 : i32, i32, i32
  }
  func.func @transform_1(%arg0: i32, %arg1: i32) -> (i32, i32) {
    %c0_i32 = arith.constant 0 : i32
    %c0_i32_0 = arith.constant 0 : i32
    %c0_i32_1 = arith.constant 0 : i32
    return %c0_i32, %c0_i32_0 : i32, i32
  }
  func.func @transform_2(%arg0: i32, %arg1: i32) -> (i32, i32) {
    %c0_i32 = arith.constant 0 : i32
    %c0_i32_0 = arith.constant 0 : i32
    %c0_i32_1 = arith.constant 0 : i32
    return %c0_i32, %c0_i32_0 : i32, i32
  }
  func.func @transform_3(%arg0: i32, %arg1: i32) -> (i32, i32) {
    %c0_i32 = arith.constant 0 : i32
    %c0_i32_0 = arith.constant 0 : i32
    %c0_i32_1 = arith.constant 0 : i32
    return %c0_i32, %c0_i32_0 : i32, i32
  }
  func.func @transform_4(%arg0: i32, %arg1: i32) -> (i32, i32) {
    %c0_i32 = arith.constant 0 : i32
    %c0_i32_0 = arith.constant 0 : i32
    %c0_i32_1 = arith.constant 0 : i32
    return %c0_i32, %c0_i32_0 : i32, i32
  }
  func.func @transform_5(%arg0: i32, %arg1: i32) -> (i32, i32, i32) {
    %c0_i32 = arith.constant 0 : i32
    %c0_i32_0 = arith.constant 0 : i32
    return %arg0, %c0_i32, %arg1 : i32, i32, i32
  }
}

</mosaic_0001>

<bundles_post_ra>
// kernel: tpu_custom_call.1
= control target key start
LH: loop header
LB: loop body
LE: loop exit
PB: predicated region body
PF: predicated region fallthrough
CT: control target
= control target key end

     0   :  { %10 = vsyncpa [#allocation3], 0  ;;  %s379_s0 = inlined_call_operand.hbm [shape: f32[2,8,256], index: 0, kind: input, shape index: {}]   ;;  %s380_s1 = inlined_call_operand.vmem [shape: f32[8,1], index: 1, kind: input, shape index: {}]   ;;  %s381_s2 = inlined_call_operand.vmem [shape: f32[8,1], index: 2, kind: input, shape index: {}]   ;;  %s382_s3 = inlined_call_operand.vmem [shape: f32[4,8], index: 3, kind: input, shape index: {}]   ;;  %s383_s4 = inlined_call_operand.vmem [shape: f32[4,1], index: 4, kind: input, shape index: {}]   ;;  %s384_s5 = inlined_call_operand.hbm [shape: f32[2,4,256], index: 5, kind: output, shape index: {}]  }
   0x1   :  { %11 = vsyncpa [#allocation4], 0  ;;  %s305_s18 = smov [#allocation2]   ;;  %s257_s22 = scalar_lea.hbm %s379_s0, 512 }
   0x2   :  { %s17_s19 = sshll.u32 %s305_s18, 4  ;;  %p258_p0 = scmp.ne.s32.totalorder %s379_s0, %s257_s22  ;;  %s18_s19 = int_to_ptr.vmem [resolvable:$true] %s17_s19 }
   0x3   :  { %p261_p1 = scmp.lt.u32.totalorder %s257_s22, %s379_s0 }
   0x5   :  { %p263_p2 = pnand %p261_p1, %p258_p0 }
   0x7   :  { %266 = shalt.err (!%p263_p2)
}
   0x8   :  { %s267_s27 = scalar_lea.vmem %s18_s19, 512  ;;  %p272_p4 = scmp.lt.s32.totalorder %s18_s19, %s18_s19 }
   0x9   :  { %p268_p3 = scmp.ne.s32.totalorder %s18_s19, %s267_s27  ;;  %p273_p5 = scmp.lt.s32.totalorder %s267_s27, %s267_s27 }
   0xb   :  { %p274_p6 = por %p273_p5, %p272_p4 }
   0xd   :  { %p275_p7 = pnand %p274_p6, %p268_p3 }
   0xf   :  { %278 = shalt.err (!%p275_p7)
}
  0x10   :  { %s306_s28 = smov 256   ;;  %s307_s29 = smov 16  }
  0x11   :  { %23 = dma.hbm_to_vmem [thread:$0]  %s379_s0, 512, %s18_s19, [#allocation3], %s306_s28, %s306_s28, %s307_s29  }
  0x12   :  { %301 = dma.done.wait [#allocation3], 512  }
  0x13   :  { %302 = vsyncadd [#allocation3], 4294966784  ;;  %v308_v0 = vmov 0   ;;  %v36_v1 = vld [vmem:[%s380_s1] sm:$0xff]  ;;  %v309_v3 = vmov 0.0   ;;  %v40_v5 = vld [vmem:[#allocation2 + $0x8] sm:$0xff] }
  0x14   :  { %255 = vset.pattern.permute.xlu0 %v308_v0  ;;  %256 = vset.pattern.permute.xlu1 %v308_v0  ;;  %v37_v2 = vld [vmem:[%s381_s2] sm:$0xff]  ;;  %v144_v7 = vld [vmem:[#allocation2 + $0x18] sm:$0xff]  ;;  %v143_v9 = vld [vmem:[#allocation2 + $0x10] sm:$0xff]  ;;  %vm62_vm0 = vcmask 64512  }
  0x15   :  { %43 = vperm.xlu0 %255, %v36_v1   ;;  %130 = vmatprep.mubr.f32.mxu0 %v309_v3  ;;  %v38_v4 = vld [vmem:[%s383_s4] sm:$0xf]  ;;  %s310_s4 = smov [#allocation5]  }
  0x16   :  { %215 = vmatprep.mubr.f32.mxu1 %v309_v3  ;;  %59 = vperm.xlu1 %256, %v38_v4   ;;  %v39_v8 = vld [vmem:[#allocation2] sm:$0xff]  ;;  %s233_s12 = sshll.u32 %s310_s4, 4  ;;  %s234_s12 = int_to_ptr.vmem [resolvable:$true] %s233_s12 }
  0x17   :  { %v35_v23 = vld [vmem:[%s382_s3] sm:$0xf]  ;;  %s279_s3 = scalar_lea.vmem %s234_s12, 256  ;;  %p284_p9 = scmp.lt.s32.totalorder %s234_s12, %s234_s12 }
  0x18   :  { %p280_p8 = scmp.ne.s32.totalorder %s234_s12, %s279_s3  ;;  %p285_p10 = scmp.lt.s32.totalorder %s279_s3, %s279_s3 }
  0x19   :  { %50 = vperm.xlu0 %255, %v37_v2  }
  0x1a   :  { %p286_p11 = por %p285_p10, %p284_p9 }
  0x1c   :  { %p287_p12 = pnand %p286_p11, %p280_p8 }
  0x94   :  { %v44_v6 = vpop.permute.xlu0 %43 }
  0x95   :  { %v47_v10 = vmul.f32 %v44_v6, %v40_v5  ;;  %v146_v11 = vmul.f32 %v144_v7, %v44_v6  ;;  %v46_v12 = vmul.f32 %v44_v6, %v39_v8  ;;  %v145_v13 = vmul.f32 %v143_v9, %v44_v6  ;;  %v60_v24 = vpop.permute.xlu1 %59 }
  0x98   :  { %v51_v14 = vpop.permute.xlu0 %50 }
  0x99   :  { %v54_v15 = vadd.f32 %v51_v14, %v47_v10  ;;  %v148_v16 = vadd.f32 %v146_v11, %v51_v14  ;;  %v53_v17 = vadd.f32 %v51_v14, %v46_v12  ;;  %v147_v18 = vadd.f32 %v145_v13, %v51_v14 }
  0x9b   :  { %v56_v19 = vmax.f32 %v54_v15, 0.0  ;;  %v150_v20 = vmax.f32 %v148_v16, 0.0  ;;  %v55_v21 = vmax.f32 %v53_v17, 0.0  ;;  %v149_v22 = vmax.f32 %v147_v18, 0.0 }
  0x9d   :  { %66 = vmatprep.subr.mxu0 %v56_v19  ;;  %151 = vmatprep.subr.mxu1 %v150_v20 }
  0x9e   :  { %67 = vmatpush1.msra.mxu0 %v55_v21  ;;  %152 = vmatpush1.msra.mxu1 %v149_v22 }
  0x9f   :  { %245 = vmatmul.mubr.msk.f32.vlgmr.msra.gmra.mrb[0].mxu0 %vm62_vm0, %v35_v23  ;;  %246 = vmatmul.mubr.msk.f32.vlgmr.msra.gmra.mrb[0].mxu1 %vm62_vm0, %v35_v23 }
 0x172   :  { %v132_v25 = vpop.f32.mrb[0].mxu0  ;;  %v217_v26 = vpop.f32.mrb[0].mxu1 }
 0x173   :  { %v133_v27 = vadd.f32 %v132_v25, %v60_v24  ;;  %v218_v28 = vadd.f32 %v217_v26, %v60_v24  ;;  %v134_v29 = vpop.f32.mrb[1].mxu0  ;;  %v219_v30 = vpop.f32.mrb[1].mxu1 }
 0x174   :  { %v135_v31 = vadd.f32 %v134_v29, %v60_v24  ;;  %v220_v32 = vadd.f32 %v219_v30, %v60_v24 }
 0x176   :  { %v139_v33 = vcombine.low %v133_v27, %v135_v31  ;;  %v224_v34 = vcombine.low %v218_v28, %v220_v32 }
 0x178   :  { %141 = vst [vmem:[#allocation5] sm:$0xff] %v139_v33  ;;  %227 = vst [vmem:[#allocation5 + $0x8] sm:$0xff] %v224_v34 }
 0x179   :  { %290 = shalt.err (!%p287_p12)
}
 0x17a   :  { %s291_s15 = scalar_lea.hbm %s384_s5, 256 }
 0x17b   :  { %p292_p13 = scmp.ne.s32.totalorder %s384_s5, %s291_s15  ;;  %p295_p0 = scmp.lt.u32.totalorder %s291_s15, %s384_s5 }
 0x17d   :  { %p297_p1 = pnand %p295_p0, %p292_p13 }
 0x17f   :  { %300 = shalt.err (!%p297_p1)
}
 0x180   :  { %s311_s20 = smov 128   ;;  %s312_s21 = smov 8  }
 0x181   :  { %239 = dma.vmem_to_hbm [thread:$0]  %s234_s12, 256, %s384_s5, [#allocation4], %s311_s20, %s311_s20, %s312_s21  }
 0x182   :  { %303 = dma.done.wait [#allocation4], 256  }
 0x183   :  { %304 = vsyncadd [#allocation4], 4294967040 }
 0x184   :  { %243 = vsyncpa [#allocation3], 1 }
 0x185   :  { %244 = vsyncpa [#allocation4], 1 }

</bundles_post_ra>
